<compile_context>
chip_gen: v6e
topology: v6e:2x2x1
jax: 0.10.0
libtpu: 0.0.40
codegen_flags: <defaults>
</compile_context>

<pallas_src>
import math
import numpy as np
import jax
import jax.numpy as jnp
from jax.experimental import pallas as pl
from jax.experimental.pallas import tpu as pltpu
from jax.scipy.special import erf as jsp_erf

TOKEN_H, TOKEN_W = 2, 3
T = TOKEN_H * TOKEN_W            # token_num = 6
C = 128                          # token_dim
MLP_EXP = 4
H_TOK = T * MLP_EXP              # 24
BS = 2
LN_EPS = 1e-5
SQRT_2_OVER_PI = math.sqrt(2.0 / math.pi)
INV_SQRT2 = 1.0 / math.sqrt(2.0)


def _gelu_tanh(x):
    # tanh-approximation GELU (single EUP tanh / element); |err| <~ 3e-4 vs exact erf GELU.
    return 0.5 * x * (1.0 + jnp.tanh(SQRT_2_OVER_PI * (x + 0.044715 * (x * x * x))))


def _round8(n):
    return -(-n // 8) * 8


def _slab_layout(bs):
    """Row offsets of every parameter block inside the single packed (rows, C) f32 slab.
    All block starts are 8-sublane aligned."""
    tb, hb = T * bs, H_TOK * bs
    a1_off = 0                         # (hb, tb)  kron(W1, I_bs)
    b1_off = a1_off + _round8(hb)      # (hb, C)   b1 repeated over bs, broadcast over lanes
    a2_off = b1_off + _round8(hb)      # (tb, hb)  kron(W2, I_bs)
    bc_off = a2_off + _round8(tb)      # (tb, C)   folded bias: outer(b2f, colsum(WcT)) + bc
    aff_off = bc_off + _round8(tb)     # row aff_off = gamma, row aff_off+1 = beta
    rows = _round8(aff_off + 2)
    return dict(tb=tb, hb=hb, a1=a1_off, b1=b1_off, a2=a2_off, bc=bc_off,
                gamma=aff_off, rows=rows)


def _build_kernel(lay):
    tb, hb = lay["tb"], lay["hb"]
    a1o, b1o, a2o, bco, go = lay["a1"], lay["b1"], lay["a2"], lay["bc"], lay["gamma"]

    def kernel(x_ref, p_ref, wct_ref, out_ref):
        """One (T*bs, C) slab per grid step.

        x_ref   : (tb, C)  f32   row r = t*bs + b  (native (T,bs,C) flattened, zero-copy)
        p_ref   : (rows,C) f32   packed parameter slab (VMEM-resident across the grid)
        wct_ref : (C, C)   bf16  channel_mlp.weight.T (VMEM-resident across the grid)
        """
        x = x_ref[...]                                                           # (tb, 128)

        # token_mlp (mixes along T for every (b, c) column); batch folded via kron weights.
        a1 = p_ref[a1o:a1o + hb, 0:tb]                                           # (hb, tb)
        h = jnp.dot(a1, x, preferred_element_type=jnp.float32) \
            + p_ref[b1o:b1o + hb, :]                                             # (hb, 128)
        h = _gelu_tanh(h)
        a2 = p_ref[a2o:a2o + tb, 0:hb]                                           # (tb, hb)
        t = jnp.dot(a2, h, preferred_element_type=jnp.float32)                   # (tb, 128)

        # channel_mlp over C: bf16 in / f32 accumulate; b2 & bc pre-folded into bc_eff.
        y = jnp.dot(t.astype(jnp.bfloat16), wct_ref[...],
                    preferred_element_type=jnp.float32) \
            + p_ref[bco:bco + tb, :]                                             # (tb, 128)

        # residual (DropPath(0.0) == identity) + LayerNorm over C.
        r = x + y
        inv_c = 1.0 / r.shape[-1]
        s1 = jnp.sum(r, axis=-1, keepdims=True)          # independent XLU reductions
        s2 = jnp.sum(r * r, axis=-1, keepdims=True)
        mean = s1 * inv_c
        var = s2 * inv_c - mean * mean
        norm = (r - mean) * jax.lax.rsqrt(var + LN_EPS)
        gb = p_ref[go:go + 2, :]                                                 # gamma/beta pair
        out_ref[...] = norm * gb[0:1, :] + gb[1:2, :]

    return kernel


def prepare_params(params, bs):
    """One-time preprocessing (NOT per forward): kron-expand token-mix weights over the batch,
    fold b2+bc into one bias slab, pack every small parameter into a single (8,128)-aligned
    f32 slab, and transpose + bf16-cast the channel weight."""
    lay = _slab_layout(bs)
    tb, hb = lay["tb"], lay["hb"]
    eye = jnp.eye(bs, dtype=jnp.float32)

    a1 = jnp.kron(params["w1"].astype(jnp.float32), eye)           # (hb, tb)
    a2 = jnp.kron(params["w2"].astype(jnp.float32), eye)           # (tb, hb)
    b1f = jnp.repeat(params["b1"].astype(jnp.float32), bs)         # (hb,)
    b2f = jnp.repeat(params["b2"].astype(jnp.float32), bs)         # (tb,)

    wct_bf16 = params["wc"].T.astype(jnp.bfloat16)                 # (C, C)
    # Folded bias: (t + b2)·WcT + bc = t·WcT + outer(b2f, colsum(WcT)) + bc
    colsum = jnp.sum(wct_bf16.astype(jnp.float32), axis=0)         # (C,)
    bc_eff = b2f[:, None] * colsum[None, :] + params["bc"].astype(jnp.float32)[None, :]

    slab = jnp.zeros((lay["rows"], C), jnp.float32)
    slab = slab.at[lay["a1"]:lay["a1"] + hb, 0:tb].set(a1)
    slab = slab.at[lay["b1"]:lay["b1"] + hb, :].set(jnp.broadcast_to(b1f[:, None], (hb, C)))
    slab = slab.at[lay["a2"]:lay["a2"] + tb, 0:hb].set(a2)
    slab = slab.at[lay["bc"]:lay["bc"] + tb, :].set(bc_eff)
    slab = slab.at[lay["gamma"], :].set(params["gamma"].astype(jnp.float32))
    slab = slab.at[lay["gamma"] + 1, :].set(params["beta"].astype(jnp.float32))

    return {"slab": slab, "wct": wct_bf16}


def _batched_call(x3, prep):
    """x3: (N, T*bs, C) f32 — N independent GlobalBlock slabs in ONE pallas_call."""
    N, TB, Cn = x3.shape
    bs = TB // T
    lay = _slab_layout(bs)
    slab, wct = prep["slab"], prep["wct"]
    assert slab.shape == (lay["rows"], Cn), \
        "prepare_params() was built for a different batch size than x"

    kernel = _build_kernel(lay)
    hb = lay["hb"]

    flops_per_slab = 2 * hb * TB * Cn + 2 * TB * hb * Cn + 2 * TB * Cn * Cn + 8 * TB * Cn
    cost = pl.CostEstimate(
        flops=N * flops_per_slab,
        transcendentals=N * (hb * Cn + TB),
        bytes_accessed=2 * N * TB * Cn * 4 + int(slab.size) * 4 + int(wct.size) * 2,
    )

    return pl.pallas_call(
        kernel,
        out_shape=jax.ShapeDtypeStruct((N, TB, Cn), jnp.float32),
        grid=(N,),
        in_specs=[
            pl.BlockSpec((None, TB, Cn), lambda n: (n, 0, 0)),      # per-slab x block
            pl.BlockSpec(slab.shape, lambda n: (0, 0)),             # param slab: VMEM-resident
            pl.BlockSpec(wct.shape, lambda n: (0, 0)),              # channel weight: VMEM-resident
        ],
        out_specs=pl.BlockSpec((None, TB, Cn), lambda n: (n, 0, 0)),
        compiler_params=pltpu.CompilerParams(dimension_semantics=("parallel",)),
        cost_estimate=cost,
    )(x3, slab, wct)


def global_block_forward(x_tbc, prep):
    """x_tbc: (T, bs, C) float32 — exactly the PyTorch module's input layout.
    `prep` must come from prepare_params(params, bs=x_tbc.shape[1])."""
    Tn, bs, Cn = x_tbc.shape
    x3 = x_tbc.reshape(1, Tn * bs, Cn)          # contiguous-dim merge -> zero-copy
    out = _batched_call(x3, prep)
    return out.reshape(Tn, bs, Cn)


def global_block_forward_batched(x_ntbc, prep):
    """x_ntbc: (N, T, bs, C) — N independent applications of the block fused into one
    pallas_call (amortized launch, weights DMA'd once, grid axis 'parallel' for v7x)."""
    N, Tn, bs, Cn = x_ntbc.shape
    x3 = x_ntbc.reshape(N, Tn * bs, Cn)
    out = _batched_call(x3, prep)
    return out.reshape(N, Tn, bs, Cn)


def reference_forward(x_tbc, params):
    """Pure-JAX mirror of GlobalBlock.forward (mlp branch, defaults), exact erf GELU, f32."""
    w1, b1 = params["w1"], params["b1"]
    w2, b2 = params["w2"], params["b2"]
    wc, bc = params["wc"], params["bc"]
    gamma, beta = params["gamma"], params["beta"]

    tokens = x_tbc                                      # (T, bs, C)
    xp = jnp.transpose(tokens, (1, 2, 0))               # (bs, C, T)
    h = xp @ w1.T + b1
    h = 0.5 * h * (1.0 + jsp_erf(h * INV_SQRT2))        # PyTorch nn.GELU() (exact erf)
    t = h @ w2.T + b2                                   # (bs, C, T)
    t_sum = jnp.transpose(t, (2, 0, 1))                 # (T, bs, C)
    t_sum = t_sum @ wc.T + bc                           # channel_mlp
    out = tokens + t_sum                                # drop_path(0.0) = identity
    mean = out.mean(-1, keepdims=True)
    var = ((out - mean) ** 2).mean(-1, keepdims=True)
    return (out - mean) / jnp.sqrt(var + LN_EPS) * gamma + beta


if __name__ == "__main__":
    key = jax.random.PRNGKey(0)
    ks = jax.random.split(key, 8)
    params = {
        "w1": jax.random.normal(ks[0], (H_TOK, T), jnp.float32) * 0.1,
        "b1": jax.random.normal(ks[1], (H_TOK,), jnp.float32) * 0.1,
        "w2": jax.random.normal(ks[2], (T, H_TOK), jnp.float32) * 0.1,
        "b2": jax.random.normal(ks[3], (T,), jnp.float32) * 0.1,
        "wc": jax.random.normal(ks[4], (C, C), jnp.float32) * 0.05,
        "bc": jax.random.normal(ks[5], (C,), jnp.float32) * 0.05,
        "gamma": jnp.ones((C,), jnp.float32),   # nn.LayerNorm default init
        "beta": jnp.zeros((C,), jnp.float32),
    }
    # Module input: tokens of shape (T, bs, C) = (token_h*token_w, batch, token_dim)
    x = jax.random.normal(ks[6], (T, BS, C), jnp.float32)

    prep = prepare_params(params, BS)           # once, not per forward

    # Single-slab forward (exact module semantics).
    fwd = jax.jit(global_block_forward)
    out = jax.block_until_ready(fwd(x, prep))
    ref = reference_forward(x, params)
    assert out.shape == (T, BS, C)
    np.testing.assert_allclose(np.asarray(out), np.asarray(ref), atol=1e-3, rtol=1e-3)

    # Batched forward: N independent slabs amortized into one pallas_call
    # (launch + weight DMA paid once; grid axis 'parallel' -> shards over v7x's two TCs).
    N_SLABS = 4
    xb = jax.random.normal(ks[7], (N_SLABS, T, BS, C), jnp.float32)
    fwd_b = jax.jit(global_block_forward_batched)
    outb = jax.block_until_ready(fwd_b(xb, prep))
    refb = jax.vmap(lambda xi: reference_forward(xi, params))(xb)
    assert outb.shape == (N_SLABS, T, BS, C)
    np.testing.assert_allclose(np.asarray(outb), np.asarray(refb), atol=1e-3, rtol=1e-3)

    print("KERNEL_OK")
</pallas_src>

<mosaic_0001>
module attributes {stable_mosaic.version = 11 : i64} {
  func.func @kernel(%arg0: i32, %arg1: memref<1x12x128xf32, #tpu.memory_space<vmem>>, %arg2: memref<136x128xf32, #tpu.memory_space<vmem>>, %arg3: memref<128x128xbf16, #tpu.memory_space<vmem>>, %arg4: memref<1x12x128xf32, #tpu.memory_space<vmem>>) attributes {dimension_semantics = [#tpu.dimension_semantics<parallel>], iteration_bounds = array<i64: 1>, scalar_prefetch = 0 : i64, scratch_operands = 0 : i64, tpu.core_type = #tpu.core_type<tc>, window_params = [{transform_indices = @transform_0, window_bounds = array<i64: 1, 12, 128>}, {pipeline_mode = #tpu.pipeline_mode<synchronous>, transform_indices = @transform_1, window_bounds = array<i64: 136, 128>}, {pipeline_mode = #tpu.pipeline_mode<synchronous>, transform_indices = @transform_2, window_bounds = array<i64: 128, 128>}, {transform_indices = @transform_3, window_bounds = array<i64: 1, 12, 128>}]} {
    %c0 = arith.constant 0 : index
    %c0_0 = arith.constant 0 : index
    %c0_1 = arith.constant 0 : index
    %0 = vector.load %arg1[%c0, %c0_0, %c0_1] : memref<1x12x128xf32, #tpu.memory_space<vmem>>, vector<1x12x128xf32>
    %1 = vector.shape_cast %0 : vector<1x12x128xf32> to vector<12x128xf32>
    %c0_2 = arith.constant 0 : index
    %c0_3 = arith.constant 0 : index
    %2 = vector.load %arg2[%c0_2, %c0_3] : memref<136x128xf32, #tpu.memory_space<vmem>>, vector<48x12xf32>
    %cst = arith.constant dense<0.000000e+00> : vector<48x128xf32>
    %3 = tpu.matmul %2, %1, %cst {dimension_numbers = #tpu.dot_dimension_numbers<[1], [0], [0], [1], [0, 0, 1, 1], [], []>} : vector<48x12xf32>, vector<12x128xf32>, vector<48x128xf32> -> vector<48x128xf32>
    %c48 = arith.constant 48 : index
    %c0_4 = arith.constant 0 : index
    %4 = vector.load %arg2[%c48, %c0_4] : memref<136x128xf32, #tpu.memory_space<vmem>>, vector<48x128xf32>
    %5 = arith.addf %3, %4 : vector<48x128xf32>
    %cst_5 = arith.constant 5.000000e-01 : f32
    %6 = vector.broadcast %cst_5 : f32 to vector<48x128xf32>
    %7 = arith.mulf %6, %5 : vector<48x128xf32>
    %8 = arith.mulf %5, %5 : vector<48x128xf32>
    %9 = arith.mulf %8, %5 : vector<48x128xf32>
    %cst_6 = arith.constant 4.471500e-02 : f32
    %10 = vector.broadcast %cst_6 : f32 to vector<48x128xf32>
    %11 = arith.mulf %10, %9 : vector<48x128xf32>
    %12 = arith.addf %5, %11 : vector<48x128xf32>
    %cst_7 = arith.constant 0.797884583 : f32
    %13 = vector.broadcast %cst_7 : f32 to vector<48x128xf32>
    %14 = arith.mulf %13, %12 : vector<48x128xf32>
    %15 = math.tanh %14 : vector<48x128xf32>
    %cst_8 = arith.constant 1.000000e+00 : f32
    %16 = vector.broadcast %cst_8 : f32 to vector<48x128xf32>
    %17 = arith.addf %16, %15 : vector<48x128xf32>
    %18 = arith.mulf %7, %17 : vector<48x128xf32>
    %c96 = arith.constant 96 : index
    %c0_9 = arith.constant 0 : index
    %19 = vector.load %arg2[%c96, %c0_9] : memref<136x128xf32, #tpu.memory_space<vmem>>, vector<12x48xf32>
    %cst_10 = arith.constant dense<0.000000e+00> : vector<12x128xf32>
    %20 = tpu.matmul %19, %18, %cst_10 {dimension_numbers = #tpu.dot_dimension_numbers<[1], [0], [0], [1], [0, 0, 1, 1], [], []>} : vector<12x48xf32>, vector<48x128xf32>, vector<12x128xf32> -> vector<12x128xf32>
    %21 = arith.truncf %20 : vector<12x128xf32> to vector<12x128xbf16>
    %c0_11 = arith.constant 0 : index
    %c0_12 = arith.constant 0 : index
    %22 = vector.load %arg3[%c0_11, %c0_12] : memref<128x128xbf16, #tpu.memory_space<vmem>>, vector<128x128xbf16>
    %cst_13 = arith.constant dense<0.000000e+00> : vector<12x128xf32>
    %23 = tpu.matmul %21, %22, %cst_13 {dimension_numbers = #tpu.dot_dimension_numbers<[1], [0], [0], [1], [0, 0, 1, 1], [], []>} : vector<12x128xbf16>, vector<128x128xbf16>, vector<12x128xf32> -> vector<12x128xf32>
    %c112 = arith.constant 112 : index
    %c0_14 = arith.constant 0 : index
    %24 = vector.load %arg2[%c112, %c0_14] : memref<136x128xf32, #tpu.memory_space<vmem>>, vector<12x128xf32>
    %25 = arith.addf %23, %24 : vector<12x128xf32>
    %26 = arith.addf %1, %25 : vector<12x128xf32>
    %cst_15 = arith.constant dense<0.000000e+00> : vector<12xf32>
    %27 = vector.multi_reduction <add>, %26, %cst_15 [1] : vector<12x128xf32> to vector<12xf32>
    %28 = vector.shape_cast %27 : vector<12xf32> to vector<12x1xf32>
    %29 = arith.mulf %26, %26 : vector<12x128xf32>
    %cst_16 = arith.constant dense<0.000000e+00> : vector<12xf32>
    %30 = vector.multi_reduction <add>, %29, %cst_16 [1] : vector<12x128xf32> to vector<12xf32>
    %31 = vector.shape_cast %30 : vector<12xf32> to vector<12x1xf32>
    %cst_17 = arith.constant 7.812500e-03 : f32
    %32 = vector.broadcast %cst_17 : f32 to vector<12x1xf32>
    %33 = arith.mulf %28, %32 : vector<12x1xf32>
    %cst_18 = arith.constant 7.812500e-03 : f32
    %34 = vector.broadcast %cst_18 : f32 to vector<12x1xf32>
    %35 = arith.mulf %31, %34 : vector<12x1xf32>
    %36 = arith.mulf %33, %33 : vector<12x1xf32>
    %37 = arith.subf %35, %36 : vector<12x1xf32>
    %38 = vector.broadcast %33 : vector<12x1xf32> to vector<12x128xf32>
    %39 = arith.subf %26, %38 : vector<12x128xf32>
    %cst_19 = arith.constant 9.99999974E-6 : f32
    %40 = vector.broadcast %cst_19 : f32 to vector<12x1xf32>
    %41 = arith.addf %37, %40 : vector<12x1xf32>
    %42 = math.rsqrt %41 : vector<12x1xf32>
    %43 = vector.broadcast %42 : vector<12x1xf32> to vector<12x128xf32>
    %44 = arith.mulf %39, %43 : vector<12x128xf32>
    %c128 = arith.constant 128 : index
    %c0_20 = arith.constant 0 : index
    %45 = vector.load %arg2[%c128, %c0_20] : memref<136x128xf32, #tpu.memory_space<vmem>>, vector<2x128xf32>
    %46 = vector.extract_strided_slice %45 {offsets = [0, 0], sizes = [1, 128], strides = [1, 1]} : vector<2x128xf32> to vector<1x128xf32>
    %47 = vector.broadcast %46 : vector<1x128xf32> to vector<12x128xf32>
    %48 = arith.mulf %44, %47 : vector<12x128xf32>
    %49 = vector.extract_strided_slice %45 {offsets = [1, 0], sizes = [1, 128], strides = [1, 1]} : vector<2x128xf32> to vector<1x128xf32>
    %50 = vector.broadcast %49 : vector<1x128xf32> to vector<12x128xf32>
    %51 = arith.addf %48, %50 : vector<12x128xf32>
    %c0_21 = arith.constant 0 : index
    %c0_22 = arith.constant 0 : index
    %c0_23 = arith.constant 0 : index
    %52 = vector.load %arg4[%c0_21, %c0_22, %c0_23] : memref<1x12x128xf32, #tpu.memory_space<vmem>>, vector<1x12x128xf32>
    %53 = vector.shape_cast %52 : vector<1x12x128xf32> to vector<12x128xf32>
    %54 = vector.shape_cast %51 : vector<12x128xf32> to vector<1x12x128xf32>
    tpu.vector_store %arg4[%c0_21, %c0_22, %c0_23], %54 {strides = array<i32>} : memref<1x12x128xf32, #tpu.memory_space<vmem>>, vector<1x12x128xf32>,
    return
  }
  func.func @transform_0(%arg0: i32) -> (i32, i32, i32) {
    %c0_i32 = arith.constant 0 : i32
    %c0_i32_0 = arith.constant 0 : i32
    %c0_i32_1 = arith.constant 0 : i32
    return %arg0, %c0_i32, %c0_i32_0 : i32, i32, i32
  }
  func.func @transform_1(%arg0: i32) -> (i32, i32) {
    %c0_i32 = arith.constant 0 : i32
    %c0_i32_0 = arith.constant 0 : i32
    %c0_i32_1 = arith.constant 0 : i32
    return %c0_i32, %c0_i32_0 : i32, i32
  }
  func.func @transform_2(%arg0: i32) -> (i32, i32) {
    %c0_i32 = arith.constant 0 : i32
    %c0_i32_0 = arith.constant 0 : i32
    %c0_i32_1 = arith.constant 0 : i32
    return %c0_i32, %c0_i32_0 : i32, i32
  }
  func.func @transform_3(%arg0: i32) -> (i32, i32, i32) {
    %c0_i32 = arith.constant 0 : i32
    %c0_i32_0 = arith.constant 0 : i32
    %c0_i32_1 = arith.constant 0 : i32
    return %arg0, %c0_i32, %c0_i32_0 : i32, i32, i32
  }
}

</mosaic_0001>

<bundles_post_ra>
// kernel: global_block_forward.1
= control target key start
LH: loop header
LB: loop body
LE: loop exit
PB: predicated region body
PF: predicated region fallthrough
CT: control target
= control target key end

     0   :  { %8 = vsyncpa [#allocation3], 0  ;;  %s729_s0 = inlined_call_operand.vmem [shape: f32[1,12,128], index: 0, kind: input, shape index: {}]   ;;  %s730_s1 = inlined_call_operand.hbm [shape: f32[136,128], index: 1, kind: input, shape index: {}]   ;;  %s731_s2 = inlined_call_operand.hbm [shape: bf16[128,128], index: 2, kind: input, shape index: {}]   ;;  %s732_s3 = inlined_call_operand.vmem [shape: f32[1,12,128], index: 3, kind: output, shape index: {}]  }
   0x1   :  { %9 = vsyncpa [#allocation5], 0  ;;  %s638_s12 = smov [#allocation2]  }
   0x2   :  { %s17_s13 = sshll.u32 %s638_s12, 4  ;;  %s18_s13 = int_to_ptr.vmem [resolvable:$true] %s17_s13 }
   0x3   :  { %s602_s14 = scalar_lea.vmem %s18_s13, 2176  ;;  %p607_p1 = scmp.lt.s32.totalorder %s18_s13, %s18_s13 }
   0x4   :  { %p603_p0 = scmp.ne.s32.totalorder %s18_s13, %s602_s14  ;;  %p608_p2 = scmp.lt.s32.totalorder %s602_s14, %s602_s14 }
   0x6   :  { %p609_p3 = por %p608_p2, %p607_p1 }
   0x8   :  { %p610_p4 = pnand %p609_p3, %p603_p0 }
   0xa   :  { %613 = shalt.err (!%p610_p4)
}
   0xb   :  { %s639_s15 = smov 128   ;;  %s640_s16 = smov 8  }
   0xc   :  { %23 = dma.hbm_to_vmem [thread:$0]  %s730_s1, 2176, %s18_s13, [#allocation3], %s639_s15, %s639_s15, %s640_s16  }
   0xd   :  { %s641_s19 = smov [#allocation4]  }
   0xe   :  { %s29_s20 = sshll.u32 %s641_s19, 4  ;;  %s30_s20 = int_to_ptr.vmem [resolvable:$true] %s29_s20 }
   0xf   :  { %s622_s21 = scalar_lea.vmem %s30_s20, 1024  ;;  %p627_p6 = scmp.lt.s32.totalorder %s30_s20, %s30_s20 }
  0x10   :  { %p623_p5 = scmp.ne.s32.totalorder %s30_s20, %s622_s21  ;;  %p628_p7 = scmp.lt.s32.totalorder %s622_s21, %s622_s21 }
  0x12   :  { %p629_p8 = por %p628_p7, %p627_p6 }
  0x14   :  { %p630_p9 = pnand %p629_p8, %p623_p5 }
  0x16   :  { %633 = shalt.err (!%p630_p9)
}
  0x17   :  { %s642_s22 = smov 64   ;;  %s643_s23 = smov 4  }
  0x18   :  { %35 = dma.hbm_to_vmem [thread:$0]  %s731_s2, 1024, %s30_s20, [#allocation5], %s642_s22, %s642_s22, %s643_s23  }
  0x19   :  { %634 = dma.done.wait [#allocation3], 2176  }
  0x1a   :  { %635 = vsyncadd [#allocation3], 4294965120 }
  0x1b   :  { %636 = dma.done.wait [#allocation5], 1024  }
  0x1c   :  { %637 = vsyncadd [#allocation5], 4294966272  ;;  %vm76_vm0 = vcmask 1043456   ;;  %vm57_vm1 = vcmask 97280   ;;  %v675_v0 = vld [vmem:[%s729_s0 + $0x8] sm:$0xf] }
  0x1d   :  { %v680_v1 = vld [vmem:[%s729_s0] sm:$0xff]  ;;  %514 = vmatprep.subr.msk.mxu1 %vm76_vm0, %v675_v0  ;;  %v46_v3 = vld [vmem:[#allocation2 + $0x8] sm:$0xff]  ;;  %v47_v4 = vld [vmem:[#allocation2 + $0x10] sm:$0xff]  ;;  %vm231_vm2 = vcmask 392192   ;;  %v644_v10 = vmov 0.0   ;;  %vm645_vm3 = vmmov 0  }
  0x1e   :  { %v45_v2 = vld [vmem:[#allocation2] sm:$0xff]  ;;  %515 = vmatpush3.msk.msra.mxu1 %vm76_vm0, %v675_v0  ;;  %v48_v5 = vld [vmem:[#allocation2 + $0x18] sm:$0xff]  ;;  %v50_v7 = vld [vmem:[#allocation2 + $0x28] sm:$0xff]  ;;  %542 = vmatprep.subr.bf16.mxu0 %v644_v10 }
  0x1f   :  { %518 = vmatprep.mubr.msk.f32.mxu1 %vm57_vm1, %v45_v2  ;;  %516 = vmatprep.subr.mxu1 %v680_v1  ;;  %v49_v6 = vld [vmem:[#allocation2 + $0x20] sm:$0xff]  ;;  %v571_v11 = vld [vmem:[#allocation4 + $0x30] sm:$0xff]   ;;  %v572_v12 = vld [vmem:[#allocation4 + $0x28] sm:$0xff]  }
  0x20   :  { %517 = vmatpush3.msra.mxu1 %v680_v1  ;;  %v229_v8 = vld [vmem:[#allocation2 + $0x60] sm:$0xff]  ;;  %v573_v13 = vld [vmem:[#allocation4 + $0x20] sm:$0xff]   ;;  %v575_v15 = vld [vmem:[#allocation4 + $0x10] sm:$0xff]   ;;  %558 = vmatprep.mubr.msk.bf16.mxu0 %vm645_vm3, %v644_v10 }
  0x21   :  { %519 = vmatmul.mubr.msk.f32.vlgmr.msra.gmra.mxu1 %vm57_vm1, %v46_v3  ;;  %v570_v9 = vld [vmem:[#allocation4 + $0x38] sm:$0xff]   ;;  %v576_v16 = vld [vmem:[#allocation4 + $0x8] sm:$0xff]   ;;  %v52_v17 = vld [vmem:[#allocation2 + $0x38] sm:$0xff] }
  0x22   :  { %521 = vmatprep.mubr.msk.f32.mxu1 %vm57_vm1, %v47_v4  ;;  %543 = vmatpush3.bf16.msra.mxu0 %v570_v9  ;;  %v574_v14 = vld [vmem:[#allocation4 + $0x18] sm:$0xff]   ;;  %v51_v19 = vld [vmem:[#allocation2 + $0x30] sm:$0xff]  ;;  %v54_v22 = vld [vmem:[#allocation2 + $0x48] sm:$0xff] }
  0x23   :  { %544 = vmatprep.subr.bf16.mxu0 %v644_v10  ;;  %v53_v25 = vld [vmem:[#allocation2 + $0x40] sm:$0xff]  ;;  %v56_v31 = vld [vmem:[#allocation2 + $0x58] sm:$0xff]  ;;  %v55_v36 = vld [vmem:[#allocation2 + $0x50] sm:$0xff] }
  0x25   :  { %522 = vmatmul.mubr.msk.f32.gmra.mxu1 %vm57_vm1, %v48_v5 }
  0x26   :  { %524 = vmatprep.mubr.msk.f32.mxu1 %vm57_vm1, %v49_v6  ;;  %545 = vmatpush3.bf16.msra.mxu0 %v571_v11 }
  0x27   :  { %546 = vmatprep.subr.bf16.mxu0 %v644_v10 }
  0x29   :  { %525 = vmatmul.mubr.msk.f32.gmra.mxu1 %vm57_vm1, %v50_v7 }
  0x2a   :  { %539 = vmatprep.mubr.msk.f32.mxu1 %vm231_vm2, %v229_v8  ;;  %547 = vmatpush3.bf16.msra.mxu0 %v572_v12 }
  0x2b   :  { %548 = vmatprep.subr.bf16.mxu0 %v644_v10 }
  0x2e   :  { %549 = vmatpush3.bf16.msra.mxu0 %v573_v13 }
  0x2f   :  { %550 = vmatprep.subr.bf16.mxu0 %v644_v10 }
  0x32   :  { %551 = vmatpush3.bf16.msra.mxu0 %v574_v14 }
  0x33   :  { %552 = vmatprep.subr.bf16.mxu0 %v644_v10 }
  0x36   :  { %553 = vmatpush3.bf16.msra.mxu0 %v575_v15 }
  0x37   :  { %554 = vmatprep.subr.bf16.mxu0 %v644_v10 }
  0x3a   :  { %555 = vmatpush3.bf16.msra.mxu0 %v576_v16 }
  0x3b   :  { %556 = vmatprep.subr.bf16.mxu0 %v644_v10 }
  0xe1   :  { %v520_v18 = vpop.f32.mrf.mxu1 }
  0xe2   :  { %v703_v20 = vadd.f32 %v520_v18, %v52_v17 }
  0xe3   :  { %v146_v21 = vpop.f32.mrf.mxu1 }
  0xe4   :  { %v705_v23 = vadd.f32 %v146_v21, %v51_v19  ;;  %v182_v27 = vmul.f32 %v703_v20, %v703_v20 }
  0xe5   :  { %v523_v24 = vpop.f32.mrf.mxu1 }
  0xe6   :  { %v162_v26 = vadd.f32 %v523_v24, %v54_v22  ;;  %v181_v32 = vmul.f32 %v705_v23, %v705_v23  ;;  %v188_v37 = vmul.f32 %v182_v27, %v703_v20 }
  0xe7   :  { %v156_v28 = vpop.f32.mrf.mxu1 }
  0xe8   :  { %v184_v29 = vmul.f32 %v162_v26, %v162_v26  ;;  %v157_v30 = vadd.f32 %v156_v28, %v53_v25  ;;  %v187_v42 = vmul.f32 %v181_v32, %v705_v23  ;;  %v194_v47 = vmul.f32 0.044715, %v188_v37  ;;  %v331_v37 = vld [vmem:[#allocation2 + $0x78] sm:$0xf] }
  0xe9   :  { %v526_v33 = vpop.f32.mrf.mxu1  ;;  %v178_v16 = vmul.f32 0.5, %v162_v26  ;;  %v176_v25 = vmul.f32 0.5, %v703_v20 }
  0xea   :  { %v190_v34 = vmul.f32 %v184_v29, %v162_v26  ;;  %v183_v35 = vmul.f32 %v157_v30, %v157_v30  ;;  %v172_v38 = vadd.f32 %v526_v33, %v56_v31  ;;  %v193_v51 = vmul.f32 0.044715, %v187_v42  ;;  %v230_v31 = vld [vmem:[#allocation2 + $0x68] sm:$0xf] }
  0xeb   :  { %v166_v39 = vpop.f32.mrf.mxu1  ;;  %v200_v55 = vadd.f32 %v194_v47, %v703_v20  ;;  %v177_v21 = vmul.f32 0.5, %v157_v30  ;;  %v175_v29 = vmul.f32 0.5, %v705_v23 }
  0xec   :  { %v196_v40 = vmul.f32 0.044715, %v190_v34  ;;  %v189_v41 = vmul.f32 %v183_v35, %v157_v30  ;;  %v186_v43 = vmul.f32 %v172_v38, %v172_v38  ;;  %v167_v44 = vadd.f32 %v166_v39, %v55_v36  ;;  %v330_v34 = vld [vmem:[#allocation2 + $0x70] sm:$0xff] }
  0xed   :  { %v199_v59 = vadd.f32 %v193_v51, %v705_v23  ;;  %v206_v62 = vmul.f32 0.7978846, %v200_v55  ;;  %v180_v6 = vmul.f32 0.5, %v172_v38 }
  0xee   :  { %v202_v45 = vadd.f32 %v196_v40, %v162_v26  ;;  %v195_v46 = vmul.f32 0.044715, %v189_v41  ;;  %v192_v48 = vmul.f32 %v186_v43, %v172_v38  ;;  %v185_v49 = vmul.f32 %v167_v44, %v167_v44 }
  0xef   :  { %v205_v2 = vmul.f32 0.7978846, %v199_v59  ;;  %v179_v11 = vmul.f32 0.5, %v167_v44 }
  0xf0   :  { %v201_v50 = vadd.f32 %v195_v46, %v157_v30  ;;  %v198_v52 = vmul.f32 0.044715, %v192_v48  ;;  %v191_v53 = vmul.f32 %v185_v49, %v167_v44  ;;  %v208_v54 = vmul.f32 0.7978846, %v202_v45  ;;  %v577_v30 = vld [vmem:[#allocation4] sm:$0xff]  }
  0xf1   :  { %557 = vmatpush3.bf16.msra.mxu0 %v577_v30 }
  0xf2   :  { %v204_v56 = vadd.f32 %v198_v52, %v172_v38  ;;  %v197_v57 = vmul.f32 0.044715, %v191_v53  ;;  %v207_v58 = vmul.f32 0.7978846, %v201_v50  ;;  %578 = vtanh.f32 %v208_v54 }
  0xf4   :  { %v210_v60 = vmul.f32 0.7978846, %v204_v56  ;;  %v203_v61 = vadd.f32 %v197_v57, %v167_v44  ;;  %v452_v56 = vlaneseq }
  0xf6   :  { %v209_v63 = vmul.f32 0.7978846, %v203_v61  ;;  %580 = vtanh.f32 %v210_v60  ;;  %v453_v59 = vshrl.u32 %v452_v56, 7  ;;  %v451_v61 = vld [vmem:[#allocation2 + $0x80] sm:$0x3] }
  0xf7   :  { %582 = vtanh.f32 %v207_v58 }
  0xf8   :  { %584 = vtanh.f32 %v209_v63  ;;  %v454_v60 = vsub.s32 0, %v453_v59 }
  0xf9   :  { %586 = vtanh.f32 %v206_v62  ;;  %v460_v62 = vsub.s32 1, %v453_v59 }
  0xfa   :  { %588 = vtanh.f32 %v205_v2  ;;  %v455_v2 = vrot.slane %v451_v61, %v454_v60 }
  0xff   :  { %v579_v3 = vpop.eup %578 }
 0x100   :  { %v220_v13 = vadd.f32 1.0, %v579_v3 }
 0x102   :  { %v226_v19 = vmul.f32 %v220_v13, %v178_v16 }
 0x103   :  { %v581_v4 = vpop.eup %580 }
 0x104   :  { %v583_v5 = vpop.eup %582  ;;  %v222_v7 = vadd.f32 1.0, %v581_v4  ;;  %v461_v4 = vrot.slane %v451_v61, %v460_v62 }
 0x105   :  { %v585_v8 = vpop.eup %584  ;;  %v219_v17 = vadd.f32 1.0, %v583_v5 }
 0x106   :  { %v228_v9 = vmul.f32 %v222_v7, %v180_v6  ;;  %v221_v12 = vadd.f32 1.0, %v585_v8  ;;  %v587_v14 = vpop.eup %586 }
 0x107   :  { %v589_v18 = vpop.eup %588  ;;  %v218_v22 = vadd.f32 1.0, %v587_v14  ;;  %v225_v24 = vmul.f32 %v219_v17, %v177_v21 }
 0x108   :  { %527 = vmatprep.subr.mxu1 %v228_v9  ;;  %v227_v15 = vmul.f32 %v221_v12, %v179_v11  ;;  %v217_v27 = vadd.f32 1.0, %v589_v18 }
 0x109   :  { %528 = vmatpush3.msra.mxu1 %v228_v9  ;;  %v224_v28 = vmul.f32 %v218_v22, %v176_v25 }
 0x10a   :  { %529 = vmatprep.subr.mxu1 %v227_v15  ;;  %v223_v26 = vmul.f32 %v217_v27, %v175_v29 }
 0x10b   :  { %530 = vmatpush3.msra.mxu1 %v227_v15 }
 0x10c   :  { %531 = vmatprep.subr.mxu1 %v226_v19 }
 0x10d   :  { %532 = vmatpush3.msra.mxu1 %v226_v19 }
 0x10e   :  { %533 = vmatprep.subr.mxu1 %v225_v24 }
 0x10f   :  { %534 = vmatpush3.msra.mxu1 %v225_v24 }
 0x110   :  { %535 = vmatprep.subr.mxu1 %v224_v28 }
 0x111   :  { %536 = vmatpush3.msra.mxu1 %v224_v28 }
 0x112   :  { %537 = vmatprep.subr.mxu1 %v223_v26 }
 0x113   :  { %538 = vmatpush3.msra.mxu1 %v223_v26 }
 0x114   :  { %540 = vmatmul.mubr.msk.f32.vlgmr.msra.gmra.mxu1 %vm231_vm2, %v230_v31 }
 0x1d4   :  { %v541_v20 = vpop.f32.mrf.mxu1 }
 0x1d6   :  { %v304_v32 = vpop.f32.mrf.mxu1 }
 0x1d7   :  { %v313_v33 = vpack.c.bf16 %v541_v20, %v304_v32 }
 0x1d9   :  { %559 = vmatmul.mubr.bf16.vlgmr.msra.gmra.mxu0 %v313_v33 }
 0x299   :  { %v414_v23 = vpop.f32.mrf.mxu0 }
 0x29a   :  { %v415_v35 = vadd.f32 %v414_v23, %v330_v34 }
 0x29b   :  { %v560_v36 = vpop.f32.mrf.mxu0 }
 0x29c   :  { %v421_v38 = vadd.f32 %v415_v35, %v680_v1 }
 0x29d   :  { %v417_v39 = vpop.f32.mrf.mxu0 }
 0x29e   :  { %v418_v40 = vadd.f32 %v417_v39, %v331_v37  ;;  %423 = vadd.xlane.f32.xlu0 %v421_v38  ;;  %v428_v41 = vmul.f32 %v421_v38, %v421_v38 }
 0x29f   :  { %v561_v42 = vpop.f32.mrf.mxu0 }
 0x2a0   :  { %v422_v43 = vadd.f32 %v418_v40, %v675_v0  ;;  %430 = vadd.xlane.f32.xlu1 %v428_v41 }
 0x2a2   :  { %v425_v10 = vsel %vm76_vm0, %v422_v43, 0.0  ;;  %v429_v44 = vmul.f32 %v422_v43, %v422_v43 }
 0x2a3   :  { %426 = vadd.xlane.f32.xlu0 %v425_v10 }
 0x2a4   :  { %v432_v45 = vsel %vm76_vm0, %v429_v44, 0.0 }
 0x2a5   :  { %433 = vadd.xlane.f32.xlu1 %v432_v45 }
 0x327   :  { %v424_v46 = vpop.xlane.xlu0 %423 }
 0x328   :  { %v435_v47 = vmul.f32 0.0078125, %v424_v46 }
 0x329   :  { %v431_v48 = vpop.xlane.xlu1 %430 }
 0x32a   :  { %v439_v49 = vmul.f32 %v435_v47, %v435_v47  ;;  %v437_v1 = vmul.f32 0.0078125, %v431_v48  ;;  %v443_v63 = vsub.f32 %v421_v38, %v435_v47 }
 0x32c   :  { %v441_v50 = vsub.f32 %v437_v1, %v439_v49  ;;  %v427_v51 = vpop.xlane.xlu0 %426 }
 0x32d   :  { %v436_v52 = vmul.f32 0.0078125, %v427_v51 }
 0x32e   :  { %v445_v53 = vadd.f32 1e-05, %v441_v50  ;;  %v434_v54 = vpop.xlane.xlu1 %433 }
 0x32f   :  { %v440_v55 = vmul.f32 %v436_v52, %v436_v52  ;;  %v438_v0 = vmul.f32 0.0078125, %v434_v54  ;;  %v444_v7 = vsub.f32 %v422_v43, %v436_v52 }
 0x330   :  { %590 = vrsqrt.f32 %v445_v53 }
 0x331   :  { %v442_v57 = vsub.f32 %v438_v0, %v440_v55 }
 0x333   :  { %v446_v58 = vadd.f32 1e-05, %v442_v57 }
 0x335   :  { %592 = vrsqrt.f32 %v446_v58 }
 0x33d   :  { %v591_v3 = vpop.eup %590 }
 0x33e   :  { %v449_v5 = vmul.f32 %v591_v3, %v443_v63 }
 0x340   :  { %v456_v6 = vmul.f32 %v455_v2, %v449_v5 }
 0x342   :  { %v593_v8 = vpop.eup %592  ;;  %v462_v9 = vadd.f32 %v461_v4, %v456_v6 }
 0x343   :  { %v450_v11 = vmul.f32 %v593_v8, %v444_v7 }
 0x344   :  { %464 = vst [vmem:[%s732_s3] sm:$0xff] %v462_v9 }
 0x345   :  { %v457_v12 = vmul.f32 %v455_v2, %v450_v11 }
 0x347   :  { %v463_v13 = vadd.f32 %v461_v4, %v457_v12 }
 0x349   :  { %465 = vst [vmem:[%s732_s3 + $0x8] sm:$0xf] %v463_v13 }
 0x34a   :  { %470 = vsyncpa [#allocation3], 1 }
 0x34b   :  { %471 = vsyncpa [#allocation5], 1 }

</bundles_post_ra>
